<compile_context>
chip_gen: v5e
topology: v5e:2x2
jax: 0.10.0
libtpu: 0.0.40
codegen_flags: <defaults>
</compile_context>

<pallas_src>
import functools

import jax
import jax.numpy as jnp
from jax import lax
from jax.experimental import pallas as pl
from jax.experimental.pallas import tpu as pltpu


_INV_SQRT2 = 0.7071067811865476
_SQRT_2_OVER_PI = 0.7978845608028654


def _cdiv(a, b):
    return -(-a // b)


def _round_up(x, m):
    return ((x + m - 1) // m) * m


def _gelu(x, mode):
    if mode == "erf":
        # Matches torch.nn.GELU() default (exact, erf-based).
        return 0.5 * x * (1.0 + lax.erf(x * _INV_SQRT2))
    # tanh approximation: transcendental lands on the EUP slot instead of a
    # long VALU polynomial.
    return 0.5 * x * (1.0 + jnp.tanh(_SQRT_2_OVER_PI * (x + 0.044715 * x * x * x)))


def _vmem_capacity_bytes():
    try:
        return int(pltpu.get_tpu_info().vmem_capacity_bytes)
    except Exception:
        return 64 * 2 ** 20  # conservative (v7x per-TensorCore VMEM)


def _mlp_kernel(x_ref, w1T_ref, b1_ref, w2T_ref, b2_ref, o_ref, *,
                x_transposed, gelu_mode):
    # w1T_ref: (hidden, in_f)     b1_ref: (hidden, 1)   f32
    # w2T_ref: (out_f, hidden)    b2_ref: (out_f, 1)    f32
    # o_ref  : (1, out_f, tile_n)  -- lane-dense store
    w1T = w1T_ref[...]
    w2T = w2T_ref[...]

    if x_transposed:
        # x_ref: (1, in_f, tile_n), already cast to the MXU dtype on the host
        # (small-channel regime; the transpose pass is the lesser evil there).
        xT = x_ref[0]
        hT = jnp.dot(w1T, xT, preferred_element_type=jnp.float32)
    else:
        # x_ref: (1, tile_n, in_f) straight from HBM (no host transpose/cast);
        # cast in-kernel and contract the channel axis of both operands so the
        # result is already (hidden, tile_n).
        xb = x_ref[0].astype(w1T.dtype)
        hT = lax.dot_general(w1T, xb, (((1,), (1,)), ((), ())),
                             preferred_element_type=jnp.float32)

    hT = hT + b1_ref[...]
    hT = _gelu(hT, gelu_mode)                                 # (hidden, tile_n) f32

    out = jnp.dot(w2T, hT.astype(w2T.dtype),
                  preferred_element_type=jnp.float32) + b2_ref[...]
    o_ref[0] = out.astype(o_ref.dtype)                        # (out_f, tile_n)


def _vmem_estimate_bytes(tn, in_f, hidden, out_f, x_bytes, w_bytes, out_bytes,
                         x_transposed):
    def padded(rows, cols, nbytes):
        return _round_up(rows, 8) * _round_up(cols, 128) * nbytes

    if x_transposed:
        x_tile = padded(in_f, tn, w_bytes)        # pre-cast to MXU dtype
    else:
        x_tile = padded(tn, in_f, x_bytes)        # original dtype, cast in kernel
    o_tile = padded(out_f, tn, out_bytes)
    weights = padded(hidden, in_f, w_bytes) + padded(out_f, hidden, w_bytes)
    biases = padded(hidden, 1, 4) + padded(out_f, 1, 4)
    hidden_act = padded(hidden, tn, 4) + padded(hidden, tn, w_bytes)
    # x/out tiles are double-buffered by the pipeline; weights counted twice
    # (default double-buffering of grid-invariant blocks), plus the hidden
    # intermediate and slack.
    return 2 * (x_tile + o_tile) + 2 * (weights + biases) + hidden_act


def prepare_mlp_params(w1, b1, w2, b2, mxu_dtype=jnp.bfloat16):
    """One-time parameter prep (hoist out of the per-call forward):
    transposed + MXU-dtype weights, f32 column biases."""
    w1T = jnp.asarray(w1).T.astype(mxu_dtype)               # (hidden, in_f)
    w2T = jnp.asarray(w2).T.astype(mxu_dtype)               # (out_f, hidden)
    b1c = jnp.asarray(b1).reshape(-1, 1).astype(jnp.float32)
    b2c = jnp.asarray(b2).reshape(-1, 1).astype(jnp.float32)
    return w1T, b1c, w2T, b2c


@functools.partial(jax.jit, static_argnames=("C", "H", "W", "tile_n_max", "gelu"))
def mlp_forward(x, w1T, b1c, w2T, b2c, *, C, H, W, tile_n_max=None, gelu="erf"):
    """x: (B, N, in_features) with N == H*W; returns (B, C, H, W) like PyTorch."""
    B, N, in_features = x.shape
    hidden, in_f_w = w1T.shape
    out_features = w2T.shape[0]
    assert in_f_w == in_features
    assert out_features == C, "out_features must equal C for the final view"
    assert N == H * W

    out_dtype = x.dtype
    x_bytes = jnp.dtype(x.dtype).itemsize
    w_bytes = jnp.dtype(w1T.dtype).itemsize
    out_bytes = jnp.dtype(out_dtype).itemsize

    cap = _vmem_capacity_bytes()
    if tile_n_max is None:
        # Bigger token tiles on 128 MiB VMEM parts (v5e/v6e); 512 on v7x.
        tile_n_max = 1024 if cap >= 96 * 2 ** 20 else 512

    # Choose tile_n from N so realistic token counts don't pad badly.
    n_tiles = max(1, _cdiv(N, tile_n_max))
    tn = _round_up(_cdiv(N, n_tiles), 128)
    N_pad = n_tiles * tn

    # Small channel counts: reading x as (tile_n, in_f) would lane-pad
    # in_f -> 128 in VMEM, so keep the pre-transposed formulation there.
    x_transposed = in_features < 128

    if x_transposed:
        x_in = jnp.transpose(x, (0, 2, 1)).astype(w1T.dtype)   # (B, in_f, N)
        if N_pad != N:
            x_in = jnp.pad(x_in, ((0, 0), (0, 0), (0, N_pad - N)))
        x_spec = pl.BlockSpec((1, in_features, tn), lambda b, j: (b, 0, j))
    else:
        x_in = x                                               # no host pass over x
        if N_pad != N:
            x_in = jnp.pad(x_in, ((0, 0), (0, N_pad - N), (0, 0)))
        x_spec = pl.BlockSpec((1, tn, in_features), lambda b, j: (b, j, 0))

    est = _vmem_estimate_bytes(tn, in_features, hidden, out_features,
                               x_bytes, w_bytes, out_bytes, x_transposed)
    # Clamp to physical VMEM minus headroom (matters on v7x's 64 MiB).
    vmem_limit = int(min(max(2 * est, 32 * 2 ** 20), cap - 8 * 2 ** 20))

    cost = pl.CostEstimate(
        flops=2 * B * N_pad * hidden * (in_features + out_features),
        transcendentals=B * N_pad * hidden,
        bytes_accessed=(B * N * in_features * x_bytes
                        + B * out_features * N * out_bytes
                        + (hidden * in_features + out_features * hidden) * w_bytes
                        + (hidden + out_features) * 4),
    )

    kernel = functools.partial(_mlp_kernel, x_transposed=x_transposed,
                               gelu_mode=gelu)

    out3d = pl.pallas_call(
        kernel,
        out_shape=jax.ShapeDtypeStruct((B, out_features, N_pad), out_dtype),
        grid_spec=pltpu.PrefetchScalarGridSpec(
            num_scalar_prefetch=0,
            grid=(B, N_pad // tn),
            in_specs=[
                x_spec,
                pl.BlockSpec((hidden, in_features), lambda b, j: (0, 0)),
                pl.BlockSpec((hidden, 1), lambda b, j: (0, 0)),
                pl.BlockSpec((out_features, hidden), lambda b, j: (0, 0)),
                pl.BlockSpec((out_features, 1), lambda b, j: (0, 0)),
            ],
            out_specs=pl.BlockSpec((1, out_features, tn), lambda b, j: (b, 0, j)),
        ),
        compiler_params=pltpu.CompilerParams(
            dimension_semantics=("parallel", "parallel"),
            vmem_limit_bytes=vmem_limit),
        cost_estimate=cost,
    )(x_in, w1T, b1c, w2T, b2c)

    out = out3d[:, :, :N] if N_pad != N else out3d             # (B, C, N)
    return out.reshape(-1, C, H, W)                            # free reshape


def init_params(key, in_features, hidden_features, out_features,
                dtype=jnp.float32):
    """Deterministic init mimicking torch.nn.Linear defaults (+/- 1/sqrt(fan_in))."""
    k1, k2, k3, k4 = jax.random.split(key, 4)
    bound1 = 1.0 / (in_features ** 0.5)
    bound2 = 1.0 / (hidden_features ** 0.5)
    w1 = jax.random.uniform(k1, (in_features, hidden_features), dtype,
                            minval=-bound1, maxval=bound1)
    b1 = jax.random.uniform(k2, (hidden_features,), dtype,
                            minval=-bound1, maxval=bound1)
    w2 = jax.random.uniform(k3, (hidden_features, out_features), dtype,
                            minval=-bound2, maxval=bound2)
    b2 = jax.random.uniform(k4, (out_features,), dtype,
                            minval=-bound2, maxval=bound2)
    return w1, b1, w2, b2


def _reference(x, w1, b1, w2, b2, C, H, W):
    h = x @ w1 + b1
    h = 0.5 * h * (1.0 + lax.erf(h / jnp.sqrt(2.0)))
    o = h @ w2 + b2
    return jnp.transpose(o, (0, 2, 1)).reshape(-1, C, H, W)


if __name__ == "__main__":
    # Primary test: shapes consistent with the forward — x is (B, N, C) tokens,
    # N = H*W, in_features = out_features = C (small-channel / pre-transposed path).
    B, C, H, W = 2, 4, 16, 16
    N = H * W
    in_features, hidden_features, out_features = C, 32, C

    key = jax.random.PRNGKey(0)
    kx, kp = jax.random.split(key)
    x = jax.random.normal(kx, (B, N, in_features), dtype=jnp.float32)
    w1, b1, w2, b2 = init_params(kp, in_features, hidden_features, out_features)

    o_ref = _reference(x, w1, b1, w2, b2, C, H, W)

    # f32 MXU path, exact erf GELU: tight tolerance vs reference.
    p32 = prepare_mlp_params(w1, b1, w2, b2, mxu_dtype=jnp.float32)
    out_f32 = jax.block_until_ready(mlp_forward(x, *p32, C=C, H=H, W=W, gelu="erf"))
    assert out_f32.shape == (B, C, H, W)
    assert jnp.allclose(out_f32, o_ref, atol=1e-5, rtol=1e-5)

    # Default deployment config: bf16 MXU operands, f32 accumulation.
    pbf = prepare_mlp_params(w1, b1, w2, b2, mxu_dtype=jnp.bfloat16)
    out_bf = jax.block_until_ready(mlp_forward(x, *pbf, C=C, H=H, W=W, gelu="erf"))
    assert out_bf.shape == (B, C, H, W)
    assert jnp.allclose(out_bf, o_ref, atol=5e-2, rtol=5e-2)

    # tanh-GELU fast path (EUP): loose tolerance only.
    out_tanh = jax.block_until_ready(mlp_forward(x, *pbf, C=C, H=H, W=W, gelu="tanh"))
    assert jnp.allclose(out_tanh, o_ref, atol=5e-2, rtol=5e-2)

    # Secondary test: in_features >= 128 exercises the untransposed-x path
    # (no host transpose pass; in-kernel cast + dot_general orientation).
    C2, H2, W2 = 8, 8, 8
    in2, hid2 = 128, 64
    x2 = jax.random.normal(jax.random.PRNGKey(1), (2, H2 * W2, in2), jnp.float32)
    w1b, b1b, w2b, b2b = init_params(jax.random.PRNGKey(2), in2, hid2, C2)
    o2_ref = _reference(x2, w1b, b1b, w2b, b2b, C2, H2, W2)
    p2 = prepare_mlp_params(w1b, b1b, w2b, b2b, mxu_dtype=jnp.float32)
    out2 = jax.block_until_ready(mlp_forward(x2, *p2, C=C2, H=H2, W=W2, gelu="erf"))
    assert out2.shape == (2, C2, H2, W2)
    assert jnp.allclose(out2, o2_ref, atol=1e-5, rtol=1e-5)

    print("KERNEL_OK")
</pallas_src>

<mosaic_0001>
module attributes {stable_mosaic.version = 11 : i64} {
  func.func @_mlp_kernel(%arg0: i32, %arg1: i32, %arg2: memref<1x4x256xf32, #tpu.memory_space<vmem>>, %arg3: memref<32x4xf32, #tpu.memory_space<vmem>>, %arg4: memref<32x1xf32, #tpu.memory_space<vmem>>, %arg5: memref<4x32xf32, #tpu.memory_space<vmem>>, %arg6: memref<4x1xf32, #tpu.memory_space<vmem>>, %arg7: memref<1x4x256xf32, #tpu.memory_space<vmem>>) attributes {dimension_semantics = [#tpu.dimension_semantics<parallel>, #tpu.dimension_semantics<parallel>], iteration_bounds = array<i64: 2, 1>, scalar_prefetch = 0 : i64, scratch_operands = 0 : i64, tpu.core_type = #tpu.core_type<tc>, window_params = [{transform_indices = @transform_0, window_bounds = array<i64: 1, 4, 256>}, {pipeline_mode = #tpu.pipeline_mode<synchronous>, transform_indices = @transform_1, window_bounds = array<i64: 32, 4>}, {pipeline_mode = #tpu.pipeline_mode<synchronous>, transform_indices = @transform_2, window_bounds = array<i64: 32, 1>}, {pipeline_mode = #tpu.pipeline_mode<synchronous>, transform_indices = @transform_3, window_bounds = array<i64: 4, 32>}, {pipeline_mode = #tpu.pipeline_mode<synchronous>, transform_indices = @transform_4, window_bounds = array<i64: 4, 1>}, {transform_indices = @transform_5, window_bounds = array<i64: 1, 4, 256>}]} {
    %c0 = arith.constant 0 : index
    %c0_0 = arith.constant 0 : index
    %0 = vector.load %arg3[%c0, %c0_0] : memref<32x4xf32, #tpu.memory_space<vmem>>, vector<32x4xf32>
    %c0_1 = arith.constant 0 : index
    %c0_2 = arith.constant 0 : index
    %1 = vector.load %arg5[%c0_1, %c0_2] : memref<4x32xf32, #tpu.memory_space<vmem>>, vector<4x32xf32>
    %c0_3 = arith.constant 0 : index
    %c0_4 = arith.constant 0 : index
    %c0_5 = arith.constant 0 : index
    %2 = vector.load %arg2[%c0_3, %c0_4, %c0_5] : memref<1x4x256xf32, #tpu.memory_space<vmem>>, vector<1x4x256xf32>
    %3 = vector.shape_cast %2 : vector<1x4x256xf32> to vector<4x256xf32>
    %cst = arith.constant dense<0.000000e+00> : vector<32x256xf32>
    %4 = tpu.matmul %0, %3, %cst {dimension_numbers = #tpu.dot_dimension_numbers<[1], [0], [0], [1], [0, 0, 1, 1], [], []>} : vector<32x4xf32>, vector<4x256xf32>, vector<32x256xf32> -> vector<32x256xf32>
    %c0_6 = arith.constant 0 : index
    %c0_7 = arith.constant 0 : index
    %5 = vector.load %arg4[%c0_6, %c0_7] : memref<32x1xf32, #tpu.memory_space<vmem>>, vector<32x1xf32>
    %6 = vector.broadcast %5 : vector<32x1xf32> to vector<32x256xf32>
    %7 = arith.addf %4, %6 : vector<32x256xf32>
    %cst_8 = arith.constant 5.000000e-01 : f32
    %8 = vector.broadcast %cst_8 : f32 to vector<32x256xf32>
    %9 = arith.mulf %8, %7 : vector<32x256xf32>
    %cst_9 = arith.constant 0.707106769 : f32
    %10 = vector.broadcast %cst_9 : f32 to vector<32x256xf32>
    %11 = arith.mulf %7, %10 : vector<32x256xf32>
    %12 = math.erf %11 : vector<32x256xf32>
    %cst_10 = arith.constant 1.000000e+00 : f32
    %13 = vector.broadcast %cst_10 : f32 to vector<32x256xf32>
    %14 = arith.addf %13, %12 : vector<32x256xf32>
    %15 = arith.mulf %9, %14 : vector<32x256xf32>
    %cst_11 = arith.constant dense<0.000000e+00> : vector<4x256xf32>
    %16 = tpu.matmul %1, %15, %cst_11 {dimension_numbers = #tpu.dot_dimension_numbers<[1], [0], [0], [1], [0, 0, 1, 1], [], []>} : vector<4x32xf32>, vector<32x256xf32>, vector<4x256xf32> -> vector<4x256xf32>
    %c0_12 = arith.constant 0 : index
    %c0_13 = arith.constant 0 : index
    %17 = vector.load %arg6[%c0_12, %c0_13] : memref<4x1xf32, #tpu.memory_space<vmem>>, vector<4x1xf32>
    %18 = vector.broadcast %17 : vector<4x1xf32> to vector<4x256xf32>
    %19 = arith.addf %16, %18 : vector<4x256xf32>
    %c0_14 = arith.constant 0 : index
    %c0_15 = arith.constant 0 : index
    %c0_16 = arith.constant 0 : index
    %20 = vector.load %arg7[%c0_14, %c0_15, %c0_16] : memref<1x4x256xf32, #tpu.memory_space<vmem>>, vector<1x4x256xf32>
    %21 = vector.shape_cast %20 : vector<1x4x256xf32> to vector<4x256xf32>
    %22 = vector.shape_cast %19 : vector<4x256xf32> to vector<1x4x256xf32>
    tpu.vector_store %arg7[%c0_14, %c0_15, %c0_16], %22 {strides = array<i32>} : memref<1x4x256xf32, #tpu.memory_space<vmem>>, vector<1x4x256xf32>,
    return
  }
  func.func @transform_0(%arg0: i32, %arg1: i32) -> (i32, i32, i32) {
    %c0_i32 = arith.constant 0 : i32
    %c0_i32_0 = arith.constant 0 : i32
    return %arg0, %c0_i32, %arg1 : i32, i32, i32
  }
  func.func @transform_1(%arg0: i32, %arg1: i32) -> (i32, i32) {
    %c0_i32 = arith.constant 0 : i32
    %c0_i32_0 = arith.constant 0 : i32
    %c0_i32_1 = arith.constant 0 : i32
    return %c0_i32, %c0_i32_0 : i32, i32
  }
  func.func @transform_2(%arg0: i32, %arg1: i32) -> (i32, i32) {
    %c0_i32 = arith.constant 0 : i32
    %c0_i32_0 = arith.constant 0 : i32
    %c0_i32_1 = arith.constant 0 : i32
    return %c0_i32, %c0_i32_0 : i32, i32
  }
  func.func @transform_3(%arg0: i32, %arg1: i32) -> (i32, i32) {
    %c0_i32 = arith.constant 0 : i32
    %c0_i32_0 = arith.constant 0 : i32
    %c0_i32_1 = arith.constant 0 : i32
    return %c0_i32, %c0_i32_0 : i32, i32
  }
  func.func @transform_4(%arg0: i32, %arg1: i32) -> (i32, i32) {
    %c0_i32 = arith.constant 0 : i32
    %c0_i32_0 = arith.constant 0 : i32
    %c0_i32_1 = arith.constant 0 : i32
    return %c0_i32, %c0_i32_0 : i32, i32
  }
  func.func @transform_5(%arg0: i32, %arg1: i32) -> (i32, i32, i32) {
    %c0_i32 = arith.constant 0 : i32
    %c0_i32_0 = arith.constant 0 : i32
    return %arg0, %c0_i32, %arg1 : i32, i32, i32
  }
}

</mosaic_0001>

<bundles_post_ra>
// kernel: mlp_forward.1
= control target key start
LH: loop header
LB: loop body
LE: loop exit
PB: predicated region body
PF: predicated region fallthrough
CT: control target
= control target key end

     0   :  { %s1003_s18 = smov 0   ;;  %s1005_s19 = smov 0   ;;  %s1379_s0 = inlined_call_operand.vmem [shape: f32[2,4,256], index: 0, kind: input, shape index: {}]   ;;  %s1380_s1 = inlined_call_operand.vmem [shape: f32[32,4], index: 1, kind: input, shape index: {}]   ;;  %s1381_s2 = inlined_call_operand.vmem [shape: f32[32,1], index: 2, kind: input, shape index: {}]   ;;  %s1382_s3 = inlined_call_operand.vmem [shape: f32[4,32], index: 3, kind: input, shape index: {}]   ;;  %s1383_s4 = inlined_call_operand.vmem [shape: f32[4,1], index: 4, kind: input, shape index: {}]   ;;  %s1384_s5 = inlined_call_operand.vmem [shape: f32[2,4,256], index: 5, kind: output, shape index: {}]  }
   0x1   :  { %s1007_s20 = smov 0  }
   0x2 LB: > { %s27_s21 = sadd.s32 1, %s966_s19  ;;  %p873_p0 = scmp.ge.s32.totalorder %s970_s20, 1  ;;  %s970_s20 = sphi %s1007_s20, %s15_s20   ;;  %s966_s19 = sphi %s1005_s19, %s1396_s19   ;;  %s962_s18 = sphi %s1003_s18, %s1395_s18  }
   0x3   : > { %p29_p1 = scmp.ge.s32.totalorder %s27_s21, 2  ;;  %p208_p2 = scmp.lt.s32.totalorder %s970_s20, 3 }
   0x5   : > { %s1398_s21 = smov (%p29_p1, %s27_s21), 0  ;;  %p209_p3 = pnand %p873_p0, %p208_p2 }
   0x6   : > { %p245_p4 = scmp.lt.s32.totalorder (!%p209_p3), %s962_s18, 1 }
   0x7   : > { %212 = sbr.rel (%p209_p3) target bundleno = 403 (0x193), region = 40 }
   0xc   : > { %v972_v0 = vmov 0   ;;  %v271_v1 = vld [vmem:[%s1381_s2 + $0x8] sm:$0xff]  ;;  %v273_v2 = vld [vmem:[%s1381_s2 + $0x18] sm:$0xff]  ;;  %s1400_s18 = smov (!%p245_p4, %s962_s18), 1  ;;  %v270_v4 = vld [vmem:[%s1381_s2] sm:$0xff]  ;;  %vm311_vm0 = vcmask 1043456  }
   0xd   : > { %930 = vset.pattern.permute.xlu1 %v972_v0  ;;  %929 = vset.pattern.permute.xlu0 %v972_v0  ;;  %s900_s26 = sshll.u32 %s1400_s18, 3  ;;  %v272_v5 = vld [vmem:[%s1381_s2 + $0x10] sm:$0xff]  ;;  %v264_v6 = vld [vmem:[%s1380_s1] sm:$0xff]  ;;  %vm298_vm1 = vcmask 31744   ;;  %v267_v7 = vld [vmem:[%s1380_s1 + $0x18] sm:$0xff] }
   0xe   : > { %281 = vperm.xlu1 %930, %v271_v1   ;;  %291 = vperm.xlu0 %929, %v273_v2   ;;  %s252_s29 = scalar_lea.vmem %s1379_s0, %s900_s26  ;;  %v265_v10 = vld [vmem:[%s1380_s1 + $0x8] sm:$0xff]  ;;  %v266_v11 = vld [vmem:[%s1380_s1 + $0x10] sm:$0xff]  ;;  %s262_s28 = scalar_lea.vmem %s1384_s5, %s900_s26 }
   0xf   : > { %931 = vset.pattern.permute.xlu2 %v972_v0  ;;  %v269_v3 = vld [vmem:[%s252_s29] sm:$0xff] }
  0x10   : > { %295 = vst [vmem:[#allocation1] ss:$2 sm:$0xff] %v269_v3 }
  0x16   : > { %276 = vperm.xlu1 %930, %v270_v4   ;;  %286 = vperm.xlu0 %929, %v272_v5  }
  0x17   : > { %v296_v8 = vld.sshfl [vmem:[#allocation1] sm:$0xff pattern:$0x75316420]  ;;  %v297_v9 = vld.sshfl [vmem:[#allocation1 + $0x8] sm:$0xff pattern:$0x75316420] }
  0x18   : > { %878 = vmatpush.msk.msra.mxu0 %vm311_vm0, %v296_v8  ;;  %902 = vmatpush.msk.msra.mxu2 %vm311_vm0, %v296_v8 }
  0x19   : > { %883 = vmatpush.msk.msra.mxu1 %vm311_vm0, %v297_v9  ;;  %903 = vmatpush.msk.msra.mxu3 %vm311_vm0, %v297_v9 }
  0x1a   : > { %879 = vmatmul.msk.f32.vlgmr.msra.gmra.mxu0 %vm298_vm1, %v264_v6  ;;  %882 = vmatmul.msk.f32.vlgmr.msra.gmra.mxu2 %vm298_vm1, %v267_v7 }
  0x1b   : > { %884 = vmatmul.msk.f32.vlgmr.msra.gmra.mxu1 %vm298_vm1, %v264_v6  ;;  %887 = vmatmul.msk.f32.vlgmr.msra.gmra.mxu3 %vm298_vm1, %v267_v7 }
  0x22   : > { %880 = vmatmul.msk.f32.gmra.mxu0 %vm298_vm1, %v265_v10 }
  0x23   : > { %885 = vmatmul.msk.f32.gmra.mxu1 %vm298_vm1, %v265_v10 }
  0x2a   : > { %881 = vmatmul.msk.f32.gmra.mxu0 %vm298_vm1, %v266_v11 }
  0x2b   : > { %886 = vmatmul.msk.f32.gmra.mxu1 %vm298_vm1, %v266_v11 }
  0x80   : > { %v282_v12 = vpop.permute.xlu1 %281  ;;  %v292_v18 = vpop.permute.xlu0 %291 }
  0x88   : > { %v277_v13 = vpop.permute.xlu1 %276  ;;  %v287_v46 = vpop.permute.xlu0 %286 }
  0x97   : > { %v333_v14 = vpop.f32.mrf.mxu0 }
  0x98   : > { %v1065_v15 = vadd.f32 %v333_v14, %v277_v13  ;;  %v362_v16 = vpop.f32.mrf.mxu1 }
  0x99   : > { %v1070_v19 = vadd.f32 %v362_v16, %v277_v13 }
  0x9a   : > { %v1068_v17 = vmul.f32 0.70710677, %v1065_v15 }
  0x9b   : > { %v1084_v29 = vmul.f32 0.70710677, %v1070_v19 }
  0x9c   : > { %v390_v21 = vmul.f32 %v1068_v17, %v1068_v17 }
  0x9d   : > { %v342_v20 = vpop.f32.mrf.mxu2  ;;  %v430_v39 = vmul.f32 %v1084_v29, %v1084_v29 }
  0x9e   : > { %v1074_v22 = vadd.f32 %v342_v20, %v292_v18  ;;  %v371_v23 = vpop.f32.mrf.mxu3  ;;  %v1091_v32 = vmin.f32 %v390_v21, 16.0 }
  0x9f   : > { %v1076_v24 = vadd.f32 %v371_v23, %v292_v18  ;;  %v336_v25 = vpop.f32.mrf.mxu0  ;;  %v1121_v53 = vmin.f32 %v430_v39, 16.0 }
  0xa0   : > { %v1079_v26 = vmul.f32 0.70710677, %v1074_v22  ;;  %v1081_v27 = vadd.f32 %v336_v25, %v282_v12  ;;  %v365_v28 = vpop.f32.mrf.mxu1  ;;  %v392_v42 = vmul.f32 2.1237322e-06, %v1091_v32 }
  0xa1   : > { %v1087_v30 = vmul.f32 0.70710677, %v1076_v24  ;;  %v1089_v31 = vadd.f32 %v365_v28, %v282_v12  ;;  %v432_v1 = vmul.f32 2.1237322e-06, %v1121_v53 }
  0xa2   : > { %v630_v33 = vmul.f32 %v1079_v26, %v1079_v26  ;;  %v1096_v34 = vmul.f32 0.70710677, %v1081_v27  ;;  %v393_v56 = vadd.f32 0.00028619796, %v392_v42 }
  0xa3   : > { %v670_v35 = vmul.f32 %v1087_v30, %v1087_v30  ;;  %v1101_v36 = vmul.f32 0.70710677, %v1089_v31  ;;  %v433_v16 = vadd.f32 0.00028619796, %v432_v1 }
  0xa4   : > { %v1103_v37 = vmin.f32 %v630_v33, 16.0  ;;  %v470_v38 = vmul.f32 %v1096_v34, %v1096_v34  ;;  %v394_v5 = vmul.f32 %v393_v56, %v1091_v32 }
  0xa5   : > { %v1109_v40 = vmin.f32 %v670_v35, 16.0  ;;  %v510_v41 = vmul.f32 %v1101_v36, %v1101_v36  ;;  %v434_v42 = vmul.f32 %v433_v16, %v1121_v53 }
  0xa6   : > { %v632_v43 = vmul.f32 2.1237322e-06, %v1103_v37  ;;  %v1115_v44 = vmin.f32 %v470_v38, 16.0  ;;  %v395_v23 = vadd.f32 0.0036580483, %v394_v5 }
  0xa7   : > { %v672_v45 = vmul.f32 2.1237322e-06, %v1109_v40  ;;  %v1118_v47 = vmin.f32 %v510_v41, 16.0  ;;  %v339_v48 = vpop.f32.mrf.mxu0 }
  0xa8   : > { %v633_v49 = vadd.f32 0.00028619796, %v632_v43  ;;  %v472_v50 = vmul.f32 2.1237322e-06, %v1115_v44  ;;  %v340_v51 = vadd.f32 %v339_v48, %v287_v46  ;;  %v368_v52 = vpop.f32.mrf.mxu1  ;;  %v1155_v43 = vmul.f32 0.5, %v1074_v22 }
  0xa9   : > { %v673_v54 = vadd.f32 0.00028619796, %v672_v45  ;;  %v512_v55 = vmul.f32 2.1237322e-06, %v1118_v47  ;;  %v1125_v59 = vadd.f32 %v368_v52, %v287_v46  ;;  %v396_v48 = vmul.f32 %v395_v23, %v1091_v32 }
  0xaa   : > { %v634_v57 = vmul.f32 %v633_v49, %v1103_v37  ;;  %v473_v58 = vadd.f32 0.00028619796, %v472_v50  ;;  %v1128_v62 = vmul.f32 0.70710677, %v340_v51  ;;  %v1160_v49 = vmul.f32 0.5, %v1076_v24 }
  0xab   : > { %v674_v60 = vmul.f32 %v673_v54, %v1109_v40  ;;  %v513_v61 = vadd.f32 0.00028619796, %v512_v55  ;;  %v1138_v8 = vmul.f32 0.70710677, %v1125_v59  ;;  %v643_v52 = vmul.f32 3.8918573e-05, %v1103_v37 }
  0xac   : > { %v635_v63 = vadd.f32 0.0036580483, %v634_v57  ;;  %v474_v0 = vmul.f32 %v473_v58, %v1115_v44  ;;  %v550_v4 = vmul.f32 %v1128_v62, %v1128_v62  ;;  %v683_v57 = vmul.f32 3.8918573e-05, %v1109_v40 }
  0xad   : > { %v675_v2 = vadd.f32 0.0036580483, %v674_v60  ;;  %v514_v3 = vmul.f32 %v513_v61, %v1118_v47  ;;  %v590_v14 = vmul.f32 %v1138_v8, %v1138_v8  ;;  %v644_v60 = vadd.f32 0.001143296, %v643_v52 }
  0xae   : > { %v636_v6 = vmul.f32 %v635_v63, %v1103_v37  ;;  %v475_v7 = vadd.f32 0.0036580483, %v474_v0  ;;  %v1141_v11 = vmin.f32 %v550_v4, 16.0  ;;  %v1168_v61 = vmul.f32 3.8918573e-05, %v1091_v32 }
  0xaf   : > { %v676_v9 = vmul.f32 %v675_v2, %v1109_v40  ;;  %v515_v10 = vadd.f32 0.0036580483, %v514_v3  ;;  %v1149_v28 = vmin.f32 %v590_v14, 16.0  ;;  %v1170_v63 = vadd.f32 0.0036580483, %v434_v42 }
  0xb0   : > { %v637_v12 = vadd.f32 0.05243302, %v636_v6  ;;  %v476_v13 = vmul.f32 %v475_v7, %v1115_v44  ;;  %v552_v21 = vmul.f32 2.1237322e-06, %v1141_v11  ;;  %v684_v1 = vadd.f32 0.001143296, %v683_v57 }
  0xb1   : > { %v677_v18 = vadd.f32 0.05243302, %v676_v9  ;;  %v516_v20 = vmul.f32 %v515_v10, %v1118_v47  ;;  %v592_v41 = vmul.f32 2.1237322e-06, %v1149_v28  ;;  %v1174_v2 = vadd.f32 0.05243302, %v396_v48 }
  0xb2   : > { %v638_v25 = vmul.f32 %v637_v12, %v1103_v37  ;;  %v477_v35 = vadd.f32 0.05243302, %v476_v13  ;;  %v553_v38 = vadd.f32 0.00028619796, %v552_v21  ;;  %v1176_v3 = vmul.f32 0.5, %v340_v51 }
  0xb3   : > { %v678_v33 = vmul.f32 %v677_v18, %v1109_v40  ;;  %v517_v39 = vadd.f32 0.05243302, %v516_v20  ;;  %v593_v50 = vadd.f32 0.00028619796, %v592_v41  ;;  %v645_v5 = vmul.f32 %v644_v60, %v1103_v37 }
  0xb4   : > { %v639_v45 = vadd.f32 0.18741608, %v638_v25  ;;  %v554_v46 = vmul.f32 %v553_v38, %v1141_v11  ;;  %v478_v55 = vmul.f32 %v477_v35, %v1115_v44  ;;  %v685_v10 = vmul.f32 %v684_v1, %v1109_v40 }
  0xb5   : > { %v679_v54 = vadd.f32 0.18741608, %v678_v33  ;;  %v518_v22 = vmul.f32 %v517_v39, %v1118_v47  ;;  %v594_v58 = vmul.f32 %v593_v50, %v1149_v28  ;;  %v646_v14 = vadd.f32 0.014752088, %v645_v5 }
  0xb6   : > { %v555_v56 = vadd.f32 0.0036580483, %v554_v46  ;;  %v640_v24 = vmul.f32 %v639_v45, %v1103_v37  ;;  %v479_v7 = vadd.f32 0.18741608, %v478_v55  ;;  %v563_v16 = vmul.f32 3.8918573e-05, %v1141_v11 }
  0xb7   : > { %v595_v4 = vadd.f32 0.0036580483, %v594_v58  ;;  %v680_v6 = vmul.f32 %v679_v54, %v1109_v40  ;;  %v519_v12 = vadd.f32 0.18741608, %v518_v22  ;;  %v686_v51 = vadd.f32 0.014752088, %v685_v10 }
  0xb8   : > { %v556_v0 = vmul.f32 %v555_v56, %v1141_v11  ;;  %v641_v18 = vadd.f32 1.1283791, %v640_v24  ;;  %v603_v21 = vmul.f32 3.8918573e-05, %v1149_v28  ;;  %v647_v25 = vmul.f32 %v646_v14, %v1103_v37 }
  0xb9   : > { %v596_v13 = vmul.f32 %v595_v4, %v1149_v28  ;;  %v564_v33 = vadd.f32 0.001143296, %v563_v16  ;;  %v483_v35 = vmul.f32 3.8918573e-05, %v1115_v44  ;;  %v687_v39 = vmul.f32 %v686_v51, %v1109_v40 }
  0xba   : > { %v557_v9 = vadd.f32 0.05243302, %v556_v0  ;;  %v604_v41 = vadd.f32 0.001143296, %v603_v21  ;;  %v523_v42 = vmul.f32 3.8918573e-05, %v1118_v47  ;;  %v480_v52 = vmul.f32 %v479_v7, %v1115_v44 }
  0xbb   : > { %v597_v23 = vadd.f32 0.05243302, %v596_v13  ;;  %v648_v46 = vadd.f32 0.112945676, %v647_v25  ;;  %v565_v48 = vmul.f32 %v564_v33, %v1141_v11  ;;  %v484_v50 = vadd.f32 0.001143296, %v483_v35 }
  0xbc   : > { %v558_v20 = vmul.f32 %v557_v9, %v1141_v11  ;;  %v688_v54 = vadd.f32 0.112945676, %v687_v39  ;;  %v605_v55 = vmul.f32 %v604_v41, %v1149_v28  ;;  %v524_v56 = vadd.f32 0.001143296, %v523_v42 }
  0xbd   : > { %v598_v45 = vmul.f32 %v597_v23, %v1149_v28  ;;  %v649_v22 = vmul.f32 %v648_v46, %v1103_v37  ;;  %v566_v58 = vadd.f32 0.014752088, %v565_v48  ;;  %v485_v60 = vmul.f32 %v484_v50, %v1115_v44 }
  0xbe   : > { %v559_v38 = vadd.f32 0.18741608, %v558_v20  ;;  %v520_v24 = vmul.f32 %v519_v12, %v1118_v47  ;;  %v689_v0 = vmul.f32 %v688_v54, %v1109_v40  ;;  %v606_v1 = vadd.f32 0.014752088, %v605_v55 }
  0xbf   : > { %v599_v57 = vadd.f32 0.18741608, %v598_v45  ;;  %v525_v4 = vmul.f32 %v524_v56, %v1118_v47  ;;  %v650_v7 = vadd.f32 0.4994258, %v649_v22  ;;  %v567_v9 = vmul.f32 %v566_v58, %v1141_v11 }
  0xc0   : > { %v560_v5 = vmul.f32 %v559_v38, %v1141_v11  ;;  %v486_v10 = vadd.f32 0.014752088, %v485_v60  ;;  %v681_v13 = vadd.f32 1.1283791, %v680_v6  ;;  %v690_v14 = vadd.f32 0.4994258, %v689_v0 }
  0xc1   : > { %v607_v16 = vmul.f32 %v606_v1, %v1149_v28  ;;  %v526_v20 = vadd.f32 0.014752088, %v525_v4  ;;  %v600_v51 = vmul.f32 %v599_v57, %v1149_v28  ;;  %v651_v12 = vmul.f32 %v650_v7, %v1103_v37 }
  0xc2   : > { %v568_v21 = vadd.f32 0.112945676, %v567_v9  ;;  %v487_v23 = vmul.f32 %v486_v10, %v1115_v44  ;;  %v481_v25 = vadd.f32 1.1283791, %v480_v52  ;;  %v691_v33 = vmul.f32 %v690_v14, %v1109_v40 }
  0xc3   : > { %v608_v35 = vadd.f32 0.112945676, %v607_v16  ;;  %v527_v38 = vmul.f32 %v526_v20, %v1118_v47  ;;  %v521_v39 = vadd.f32 1.1283791, %v520_v24  ;;  %v561_v41 = vadd.f32 1.1283791, %v560_v5 }
  0xc4   : > { %v1206_v6 = vadd.f32 1.0, %v651_v12  ;;  %v569_v42 = vmul.f32 %v568_v21, %v1141_v11  ;;  %v1209_v45 = vadd.f32 1.0, %v691_v33  ;;  %v488_v37 = vadd.f32 0.112945676, %v487_v23 }
  0xc5   : > { %v609_v46 = vmul.f32 %v608_v35, %v1149_v28  ;;  %v528_v48 = vadd.f32 0.112945676, %v527_v38  ;;  %v1213_v50 = vmul.f32 %v641_v18, %v1079_v26  ;;  %v1216_v40 = vmul.f32 0.5, %v1125_v59 }
  0xc6   : > { %v601_v52 = vadd.f32 1.1283791, %v600_v51  ;;  %932 = vrcp.f32 %v1206_v6  ;;  %v1220_v54 = vmul.f32 %v681_v13, %v1087_v30  ;;  %v1223_v55 = vmul.f32 %v481_v25, %v1096_v34 }
  0xc7   : > { %934 = vrcp.f32 %v1209_v45  ;;  %v404_v56 = vadd.f32 0.001143296, %v1168_v61  ;;  %v1228_v57 = vmul.f32 %v521_v39, %v1101_v36  ;;  %v1231_v26 = vmul.f32 %v561_v41, %v1128_v62 }
  0xc8   : > { %v570_v59 = vadd.f32 0.4994258, %v569_v42  ;;  %v610_v18 = vadd.f32 0.4994258, %v609_v46  ;;  %v662_v22 = vand.u32 2147483647, %v1206_v6  ;;  %v489_v58 = vmul.f32 %v488_v37, %v1115_v44 }
  0xc9   : > { %v664_v30 = vand.u32 2147483648, %v1206_v6  ;;  %v529_v34 = vmul.f32 %v528_v48, %v1118_v47  ;;  %v1238_v60 = vmul.f32 %v601_v52, %v1138_v8  ;;  %v702_v61 = vand.u32 2147483647, %v1209_v45 }
  0xca   : > { %v571_v36 = vmul.f32 %v570_v59, %v1141_v11  ;;  %v611_v62 = vmul.f32 %v610_v18, %v1149_v28  ;;  %vm658_vm2 = vweird.f32 %v1206_v6  ;;  %v490_v24 = vadd.f32 0.4994258, %v489_v58 }
  0xcb   : > { %v530_v0 = vadd.f32 0.4994258, %v529_v34  ;;  %v405_v1 = vmul.f32 %v404_v56, %v1091_v32  ;;  %vm698_vm3 = vweird.f32 %v1209_v45  ;;  %v704_v5 = vand.u32 2147483648, %v1209_v45 }
  0xcc   : > { %v933_v4 = vpop.eup %932  ;;  %v1247_v7 = vadd.f32 1.0, %v571_v36  ;;  %v1249_v8 = vadd.f32 1.0, %v611_v62  ;;  %vm1252_vm4 = vcmp.eq.f32.partialorder %v662_v22, 8.507059e+37  ;;  %v665_v10 = vor.u32 1.1754944e-38, %v664_v30 }
  0xcd   : > { %v935_v9 = vpop.eup %934  ;;  %v654_v11 = vmul.f32 %v933_v4, %v1206_v6  ;;  %v491_v13 = vmul.f32 %v490_v24, %v1115_v44  ;;  %vm1258_vm5 = vcmp.eq.f32.partialorder %v702_v61, 8.507059e+37  ;;  %v531_v20 = vmul.f32 %v530_v0, %v1118_v47 }
  0xce   : > { %v694_v14 = vmul.f32 %v935_v9, %v1209_v45  ;;  %936 = vrcp.f32 %v1247_v7  ;;  %v406_v12 = vadd.f32 0.014752088, %v405_v1  ;;  %v443_v21 = vmul.f32 3.8918573e-05, %v1121_v53 }
  0xcf   : > { %v655_v51 = vsub.f32 1.0, %v654_v11  ;;  %938 = vrcp.f32 %v1249_v8  ;;  %vm659_vm6 = vweird.f32 %v933_v4  ;;  %v705_v25 = vor.u32 1.1754944e-38, %v704_v5 }
  0xd0   : > { %v695_v23 = vsub.f32 1.0, %v694_v14  ;;  %v582_v44 = vand.u32 2147483647, %v1247_v7  ;;  %v584_v35 = vand.u32 2147483648, %v1247_v7  ;;  %v624_v38 = vand.u32 2147483648, %v1249_v8  ;;  %vm660_vm8 = vmor %vm658_vm2, %vm659_vm6 }
  0xd1   : > { %v656_v33 = vmul.f32 %v933_v4, %v655_v51  ;;  %v1269_v39 = vadd.f32 1.0, %v491_v13  ;;  %vm699_vm7 = vweird.f32 %v935_v9  ;;  %v622_v47 = vand.u32 2147483647, %v1249_v8 }
  0xd2   : > { %v696_v41 = vmul.f32 %v935_v9, %v695_v23  ;;  %v1272_v42 = vadd.f32 1.0, %v531_v20  ;;  %v407_v37 = vmul.f32 %v406_v12, %v1091_v32  ;;  %v444_v48 = vadd.f32 0.001143296, %v443_v21  ;;  %vm700_vm11 = vmor %vm698_vm3, %vm699_vm7 }
  0xd3   : > { %v657_v46 = vadd.f32 %v933_v4, %v656_v33  ;;  %940 = vrcp.f32 %v1269_v39  ;;  %vm578_vm9 = vweird.f32 %v1247_v7  ;;  %vm618_vm10 = vweird.f32 %v1249_v8 }
  0xd4   : > { %v937_v52 = vpop.eup %936  ;;  %v697_v56 = vadd.f32 %v935_v9, %v696_v41  ;;  %942 = vrcp.f32 %v1272_v42  ;;  %vm1286_vm12 = vcmp.eq.f32.partialorder %v582_v44, 8.507059e+37  ;;  %v585_v6 = vor.u32 1.1754944e-38, %v584_v35 }
  0xd5   : > { %v939_v59 = vpop.eup %938  ;;  %v661_v18 = vsel %vm660_vm8, %v933_v4, %v657_v46  ;;  %v574_v22 = vmul.f32 %v937_v52, %v1247_v7  ;;  %v625_v58 = vor.u32 1.1754944e-38, %v624_v38  ;;  %vm1293_vm13 = vcmp.eq.f32.partialorder %v622_v47, 8.507059e+37 }
  0xd6   : > { %v666_v34 = vsel %vm1252_vm4, %v665_v10, %v661_v18  ;;  %v701_v61 = vsel %vm700_vm11, %v935_v9, %v697_v56  ;;  %v614_v36 = vmul.f32 %v939_v59, %v1249_v8  ;;  %v502_v45 = vand.u32 2147483647, %v1269_v39 }
  0xd7   : > { %v667_v24 = vmul.f32 %v666_v34, %v1213_v50  ;;  %v706_v0 = vsel %vm1258_vm5, %v705_v25, %v701_v61  ;;  %v575_v1 = vsub.f32 1.0, %v574_v22  ;;  %v504_v4 = vand.u32 2147483648, %v1269_v39 }
  0xd8   : > { %v707_v5 = vmul.f32 %v706_v0, %v1220_v54  ;;  %vm579_vm14 = vweird.f32 %v937_v52  ;;  %v615_v9 = vsub.f32 1.0, %v614_v36  ;;  %vm619_vm15 = vweird.f32 %v939_v59 }
  0xd9   : > { %vm498_vm1 = vweird.f32 %v1269_v39  ;;  %v941_v11 = vpop.eup %940  ;;  %v894_v28 = vclamps-f32 %v667_v24, 1.0  ;;  %v576_v10 = vmul.f32 %v937_v52, %v575_v1  ;;  %vm538_vm2 = vweird.f32 %v1272_v42  ;;  %vm580_vm4 = vmor %vm578_vm9, %vm579_vm14 }
  0xda   : > { %v542_v50 = vand.u32 2147483647, %v1272_v42  ;;  %v544_v13 = vand.u32 2147483648, %v1272_v42  ;;  %v943_v14 = vpop.eup %942  ;;  %v895_v16 = vclamps-f32 %v707_v5, 1.0  ;;  %v616_v20 = vmul.f32 %v939_v59, %v615_v9  ;;  %vm620_vm6 = vmor %vm618_vm10, %vm619_vm15 }
  0xdb   : > { %v494_v51 = vmul.f32 %v941_v11, %v1269_v39  ;;  %vm1308_vm3 = vcmp.eq.f32.partialorder %v502_v45, 8.507059e+37  ;;  %v408_v12 = vadd.f32 0.112945676, %v407_v37  ;;  %v716_v21 = vadd.f32 1.0, %v894_v28 }
  0xdc   : > { %v577_v23 = vadd.f32 %v937_v52, %v576_v10  ;;  %v534_v25 = vmul.f32 %v943_v14, %v1272_v42  ;;  %v445_v44 = vmul.f32 %v444_v48, %v1121_v53  ;;  %v717_v33 = vadd.f32 1.0, %v895_v16 }
  0xdd   : > { %v617_v35 = vadd.f32 %v939_v59, %v616_v20  ;;  %v495_v38 = vsub.f32 1.0, %v494_v51  ;;  %vm499_vm5 = vweird.f32 %v941_v11  ;;  %v724_v41 = vmul.f32 %v716_v21, %v1155_v43 }
  0xde   : > { %v581_v47 = vsel %vm580_vm4, %v937_v52, %v577_v23  ;;  %v535_v46 = vsub.f32 1.0, %v534_v25  ;;  %vm539_vm7 = vweird.f32 %v943_v14  ;;  %v725_v37 = vmul.f32 %v717_v33, %v1160_v49  ;;  %vm500_vm8 = vmor %vm498_vm1, %vm499_vm5 }
  0xdf   : > { %v586_v48 = vsel %vm1286_vm12, %v585_v6, %v581_v47  ;;  %v621_v56 = vsel %vm620_vm6, %v939_v59, %v617_v35  ;;  %v496_v7 = vmul.f32 %v941_v11, %v495_v38  ;;  %748 = vmatpush.msrb.mxu2 %v724_v41  ;;  %v409_v22 = vmul.f32 %v408_v12, %v1091_v32  ;;  %vm540_vm10 = vmor %vm538_vm2, %vm539_vm7 }
  0xe0   : > { %v587_v18 = vmul.f32 %v586_v48, %v1231_v26  ;;  %v626_v43 = vsel %vm1293_vm13, %v625_v58, %v621_v56  ;;  %v536_v52 = vmul.f32 %v943_v14, %v535_v46  ;;  %768 = vmatpush.msrb.mxu3 %v725_v37  ;;  %v505_v61 = vor.u32 1.1754944e-38, %v504_v4 }
  0xe1   : > { %v627_v8 = vmul.f32 %v626_v43, %v1238_v60  ;;  %v497_v34 = vadd.f32 %v941_v11, %v496_v7  ;;  %v446_v49 = vadd.f32 0.014752088, %v445_v44  ;;  %vm543_vm9 = vcmp.eq.f32.partialorder %v542_v50, 8.507059e+37 }
  0xe2   : > { %v892_v36 = vclamps-f32 %v587_v18, 1.0  ;;  %v537_v59 = vadd.f32 %v943_v14, %v536_v52  ;;  %v410_v26 = vadd.f32 0.4994258, %v409_v22  ;;  %v545_v58 = vor.u32 1.1754944e-38, %v544_v13 }
  0xe3   : > { %v893_v30 = vclamps-f32 %v627_v8, 1.0  ;;  %v501_v6 = vsel %vm500_vm8, %v941_v11, %v497_v34  ;;  %v447_v60 = vmul.f32 %v446_v49, %v1121_v53  ;;  %v436_v9 = vmul.f32 %v1170_v63, %v1121_v53 }
  0xe4   : > { %v714_v62 = vadd.f32 1.0, %v892_v36  ;;  %v506_v45 = vsel %vm1308_vm3, %v505_v61, %v501_v6  ;;  %v541_v24 = vsel %vm540_vm10, %v943_v14, %v537_v59  ;;  %v411_v39 = vmul.f32 %v410_v26, %v1091_v32 }
  0xe5   : > { %v715_v0 = vadd.f32 1.0, %v893_v30  ;;  %v507_v1 = vmul.f32 %v506_v45, %v1223_v55  ;;  %v546_v4 = vsel %vm543_vm9, %v545_v58, %v541_v24  ;;  %v448_v5 = vadd.f32 0.112945676, %v447_v60  ;;  %v268_v45 = vld [vmem:[%s1382_s3] sm:$0xf] }
  0xe6   : > { %v722_v42 = vmul.f32 %v714_v62, %v1176_v3  ;;  %v547_v11 = vmul.f32 %v546_v4, %v1228_v57  ;;  %v412_v28 = vadd.f32 1.0, %v411_v39  ;;  %v398_v10 = vmul.f32 %v1174_v2, %v1091_v32  ;;  %v726_v2 = vld [vmem:[%s1383_s4] sm:$0xf] }
  0xe7   : > { %v723_v50 = vmul.f32 %v715_v0, %v1216_v40  ;;  %v890_v13 = vclamps-f32 %v507_v1, 1.0  ;;  %v449_v14 = vmul.f32 %v448_v5, %v1121_v53  ;;  %v376_v16 = vmul.f32 0.5, %v1081_v27  ;;  %729 = vperm.xlu2 %931, %v726_v2  }
  0xe8   : > { %749 = vmatpush.msrb.mxu2 %v722_v42  ;;  %v891_v55 = vclamps-f32 %v547_v11, 1.0  ;;  %944 = vrcp.f32 %v412_v28  ;;  %v437_v3 = vadd.f32 0.05243302, %v436_v9  ;;  %v377_v57 = vmul.f32 0.5, %v1089_v31 }
  0xe9   : > { %769 = vmatpush.msrb.mxu3 %v723_v50  ;;  %v712_v63 = vadd.f32 1.0, %v890_v13  ;;  %v450_v20 = vadd.f32 0.4994258, %v449_v14  ;;  %v399_v40 = vadd.f32 0.18741608, %v398_v10  ;;  %v424_v38 = vand.u32 2147483648, %v412_v28 }
  0xea   : > { %v713_v51 = vadd.f32 1.0, %v891_v55  ;;  %v438_v25 = vmul.f32 %v437_v3, %v1121_v53  ;;  %v422_v46 = vand.u32 2147483647, %v412_v28  ;;  %vm418_vm12 = vweird.f32 %v412_v28 }
  0xeb   : > { %v720_v54 = vmul.f32 %v712_v63, %v376_v16  ;;  %v451_v12 = vmul.f32 %v450_v20, %v1121_v53  ;;  %v400_v44 = vmul.f32 %v399_v40, %v1091_v32  ;;  %v425_v7 = vor.u32 1.1754944e-38, %v424_v38 }
  0xec   : > { %v721_v21 = vmul.f32 %v713_v51, %v377_v57  ;;  %v439_v35 = vadd.f32 0.18741608, %v438_v25  ;;  %vm423_vm14 = vcmp.eq.f32.partialorder %v422_v46, 8.507059e+37  ;;  %vm732_vm4 = vcmask 261120  }
  0xed   : > { %750 = vmatpush.msrb.mxu2 %v720_v54  ;;  %v452_v23 = vadd.f32 1.0, %v451_v12  ;;  %v401_v41 = vadd.f32 1.1283791, %v400_v44 }
  0xee   : > { %v945_v27 = vpop.eup %944  ;;  %770 = vmatpush.msrb.mxu3 %v721_v21  ;;  %v440_v56 = vmul.f32 %v439_v35, %v1121_v53  ;;  %v374_v53 = vmul.f32 0.5, %v1065_v15  ;;  %v375_v15 = vmul.f32 0.5, %v1070_v19 }
  0xef   : > { %v414_v31 = vmul.f32 %v945_v27, %v412_v28  ;;  %946 = vrcp.f32 %v452_v23  ;;  %vm419_vm11 = vweird.f32 %v945_v27  ;;  %v402_v43 = vmul.f32 %v401_v41, %v1068_v17 }
  0xf0   : > { %vm420_vm13 = vmor %vm418_vm12, %vm419_vm11  ;;  %v464_v34 = vand.u32 2147483648, %v452_v23  ;;  %v441_v61 = vadd.f32 1.1283791, %v440_v56  ;;  %v462_v36 = vand.u32 2147483647, %v452_v23  ;;  %vm458_vm1 = vweird.f32 %v452_v23 }
  0xf1   : > { %v415_v33 = vsub.f32 1.0, %v414_v31 }
  0xf2   : > { %v465_v6 = vor.u32 1.1754944e-38, %v464_v34  ;;  %v442_v17 = vmul.f32 %v441_v61, %v1084_v29  ;;  %vm463_vm3 = vcmp.eq.f32.partialorder %v462_v36, 8.507059e+37 }
  0xf3   : > { %v416_v47 = vmul.f32 %v945_v27, %v415_v33 }
  0xf5   : > { %v947_v37 = vpop.eup %946  ;;  %v417_v48 = vadd.f32 %v945_v27, %v416_v47 }
  0xf6   : > { %v454_v18 = vmul.f32 %v947_v37, %v452_v23  ;;  %vm459_vm15 = vweird.f32 %v947_v37 }
  0xf7   : > { %v421_v32 = vsel %vm420_vm13, %v945_v27, %v417_v48  ;;  %vm460_vm2 = vmor %vm458_vm1, %vm459_vm15 }
  0xf8   : > { %v426_v52 = vsel %vm423_vm14, %v425_v7, %v421_v32  ;;  %v455_v22 = vsub.f32 1.0, %v454_v18 }
  0xf9   : > { %v427_v8 = vmul.f32 %v426_v52, %v402_v43 }
  0xfa   : > { %v456_v49 = vmul.f32 %v947_v37, %v455_v22 }
  0xfb   : > { %v888_v59 = vclamps-f32 %v427_v8, 1.0 }
  0xfc   : > { %v457_v26 = vadd.f32 %v947_v37, %v456_v49 }
  0xfd   : > { %v710_v30 = vadd.f32 1.0, %v888_v59 }
  0xfe   : > { %v461_v58 = vsel %vm460_vm2, %v947_v37, %v457_v26 }
  0xff   : > { %v718_v60 = vmul.f32 %v710_v30, %v374_v53  ;;  %v466_v62 = vsel %vm463_vm3, %v465_v6, %v461_v58 }
 0x100   : > { %v467_v24 = vmul.f32 %v466_v62, %v442_v17 }
 0x101   : > { %751 = vmatpush.msrb.mxu2 %v718_v60 }
 0x102   : > { %v889_v39 = vclamps-f32 %v467_v24, 1.0  ;;  %896 = vmatmul.msk.f32.vlgmr.msrb.gmra.mxu2 %vm732_vm4, %v268_v45 }
 0x104   : > { %v711_v0 = vadd.f32 1.0, %v889_v39 }
 0x106   : > { %v719_v1 = vmul.f32 %v711_v0, %v375_v15 }
 0x108   : > { %771 = vmatpush.msrb.mxu3 %v719_v1 }
 0x109   : > { %897 = vmatmul.msk.f32.vlgmr.msrb.gmra.mxu3 %vm732_vm4, %v268_v45 }
 0x141   : > { %v730_v29 = vpop.permute.xlu2 %729 }
 0x185   : > { %v753_v5 = vpop.f32.mrf.mxu2 }
 0x186   : > { %v754_v11 = vadd.f32 %v753_v5, %v730_v29 }
 0x18c   : > { %v773_v4 = vpop.f32.mrf.mxu3 }
 0x18d   : > { %v774_v9 = vadd.f32 %v773_v4, %v730_v29 }
 0x18f   : > { %v778_v42 = vrot.slane %v774_v9, 4 }
 0x191   : > { %v779_v28 = vsel %vm311_vm0, %v754_v11, %v778_v42 }
 0x192   : > { %781 = vst [vmem:[%s262_s28] sm:$0xff] %v779_v28 }
 0x193 PF: > { %s15_s20 = sadd.s32 1, %s970_s20   ;;  %s1395_s18 = smov %s966_s19 }
 0x194   : > { %p12_p5 = scmp.ge.s32.totalorder %s15_s20, 4   ;;  %s1396_s19 = smov %s1398_s21 }
 0x196   :  { %14 = sbr.rel (!%p12_p5) target bundleno = 2 (0x2), region = 70 }

</bundles_post_ra>
